<compile_context>
chip_gen: v5e
topology: v5e:2x2
jax: 0.10.0
libtpu: 0.0.40
codegen_flags: <defaults>
</compile_context>

<pallas_src>
import functools

import jax
import jax.numpy as jnp
from jax.experimental import pallas as pl
from jax.experimental.pallas import tpu as pltpu

EPS = 1e-5  # matches the usual CUDA batchnorm2d_forward default
_LANE = 128


def _vmem_capacity_bytes():
    try:
        return int(pltpu.get_tpu_info().vmem_capacity_bytes)
    except Exception:
        return 64 << 20  # conservative: v7x physical VMEM


def _sublane_mult(itemsize):
    if itemsize >= 4:
        return 8
    if itemsize == 2:
        return 16
    return 32


def _choose_tiles(c, hw, itemsize, target_bytes):
    """Pick (c_tile, hw_tile) for the tiled two-pass path."""
    c_mult = _sublane_mult(itemsize)
    if c % c_mult == 0:
        c_tile = min(c, 4 * c_mult)
        while c % c_tile != 0:      # terminates: c_mult always divides c here
            c_tile -= c_mult
        # v7x megacore: keep >= 2 channel blocks when the channel count allows.
        if c // c_tile < 2 and c >= 2 * c_mult:
            c_tile = c_mult
    else:
        c_tile = c                  # bounded full-extent sublane block
    if hw % _LANE == 0:
        tgt = max(_LANE, (target_bytes // (itemsize * c_tile)) // _LANE * _LANE)
        hw_tile = min(hw, tgt)
        while hw % hw_tile != 0:    # terminates: 128 always divides hw here
            hw_tile -= _LANE
    else:
        hw_tile = hw                # wrapper guarantees this stays small
    return c_tile, hw_tile


# ---------------------------------------------------------------------------
# Kernels
# ---------------------------------------------------------------------------
def _bn_fused_kernel(inv_count, x_ref, gamma_ref, beta_ref, o_ref):
    # x_ref / o_ref: (N, C_TILE, HW) — the full per-channel slab.
    x = x_ref[...].astype(jnp.float32)
    s = jnp.sum(x, axis=(0, 2), keepdims=True)           # (1, C_TILE, 1)
    ss = jnp.sum(x * x, axis=(0, 2), keepdims=True)
    mean = s * inv_count
    var = jnp.maximum(ss * inv_count - mean * mean, 0.0)  # biased variance
    inv_std = jax.lax.rsqrt(var + EPS)
    gamma = gamma_ref[...].astype(jnp.float32)[None]       # (1, C_TILE, 1)
    beta = beta_ref[...].astype(jnp.float32)[None]
    scale = gamma * inv_std
    bias = beta - mean * scale
    o_ref[...] = (x * scale + bias).astype(o_ref.dtype)


def _bn_stats_kernel(x_ref, stats_ref):
    # x_ref:     (C_TILE, HW_TILE)
    # stats_ref: (C_TILE, 2) f32 — packed [sum, sumsq] accumulator, resident
    #            across the two reduction grid axes (n, hw).
    @pl.when(jnp.logical_and(pl.program_id(2) == 0, pl.program_id(3) == 0))
    def _init():
        stats_ref[...] = jnp.zeros_like(stats_ref)

    x = x_ref[...].astype(jnp.float32)
    s = jnp.sum(x, axis=-1, keepdims=True)
    ss = jnp.sum(x * x, axis=-1, keepdims=True)
    stats_ref[...] += jnp.concatenate([s, ss], axis=-1)


def _bn_norm_kernel(x_ref, scale_ref, bias_ref, o_ref):
    # Pure per-channel FMA: y = x * scale + bias.
    x = x_ref[...].astype(jnp.float32)
    o_ref[...] = (x * scale_ref[...] + bias_ref[...]).astype(o_ref.dtype)


# ---------------------------------------------------------------------------
# Wrapper
# ---------------------------------------------------------------------------
def batchnorm2d_forward(x, gamma, beta, *, force_two_pass=False):
    """x: (N, C, H, W); gamma, beta: (C,). Returns normalized (N, C, H, W)."""
    assert x.ndim == 4
    n, c, h, w = x.shape
    hw = h * w
    count = n * hw
    inv_count = 1.0 / float(count)
    itemsize = jnp.dtype(x.dtype).itemsize
    cap = _vmem_capacity_bytes()

    # Free, contiguous reshape only (no HBM transpose).
    x3 = x.reshape(n, c, hw)

    # Lane alignment: zero-pad HW only when it is unaligned AND large.  Zero
    # padding keeps sum/sumsq exact because we divide by the true count.
    hw_work = hw
    if hw % _LANE != 0 and hw * itemsize > (64 << 10):
        hw_work = pl.cdiv(hw, _LANE) * _LANE
        x3 = jnp.pad(x3, ((0, 0), (0, 0), (0, hw_work - hw)))

    g2 = gamma.reshape(c, 1)
    b2 = beta.reshape(c, 1)

    c_mult = _sublane_mult(itemsize)
    c_tile_f = c_mult if c % c_mult == 0 else c
    slab = n * c_tile_f * hw_work
    fused_need = 4 * slab * itemsize + 3 * slab * 4 + (2 << 20)

    if (not force_two_pass) and fused_need <= int(0.7 * cap):
        # ---------------- fused single-pass path ----------------------------
        vmem_limit = int(max(16 << 20,
                             min(int(0.85 * cap), fused_need + (2 << 20))))
        slab_spec = pl.BlockSpec((n, c_tile_f, hw_work), lambda ci: (0, ci, 0))
        vec_spec = pl.BlockSpec((c_tile_f, 1), lambda ci: (ci, 0))
        out3 = pl.pallas_call(
            functools.partial(_bn_fused_kernel, inv_count),
            out_shape=jax.ShapeDtypeStruct((n, c, hw_work), x.dtype),
            grid=(c // c_tile_f,),
            in_specs=[slab_spec, vec_spec, vec_spec],
            out_specs=slab_spec,
            compiler_params=pltpu.CompilerParams(
                dimension_semantics=("parallel",),
                vmem_limit_bytes=vmem_limit),
        )(x3, g2, b2)
    else:
        # ---------------- two-pass path for large activations ---------------
        target_bytes = min(4 << 20, cap // 24)   # ~4 MiB v5e/v6e, ~2.6 MiB v7x
        c_tile, hw_tile = _choose_tiles(c, hw_work, itemsize, target_bytes)
        c_blocks = c // c_tile
        hw_blocks = hw_work // hw_tile
        block_bytes = c_tile * hw_tile * itemsize
        vmem_limit = int(max(16 << 20,
                             min(int(0.85 * cap), 8 * block_bytes + (4 << 20))))

        # v7x megacore: with a single channel block, split the batch reduction
        # two ways (leading "parallel" axis) so both TensorCores sweep x.
        split = 2 if (c_blocks < 2 and n % 2 == 0 and n >= 2) else 1
        n_per_split = n // split

        x_stats_spec = pl.BlockSpec(
            (None, c_tile, hw_tile),
            lambda sp, ci, ni, hi: (sp * n_per_split + ni, ci, hi))
        stats_spec = pl.BlockSpec((None, c_tile, 2),
                                  lambda sp, ci, ni, hi: (sp, ci, 0))

        stats = pl.pallas_call(
            _bn_stats_kernel,
            out_shape=jax.ShapeDtypeStruct((split, c, 2), jnp.float32),
            grid=(split, c_blocks, n_per_split, hw_blocks),
            in_specs=[x_stats_spec],
            out_specs=stats_spec,
            compiler_params=pltpu.CompilerParams(
                dimension_semantics=("parallel", "parallel",
                                     "arbitrary", "arbitrary"),
                vmem_limit_bytes=vmem_limit),
        )(x3)

        # Tiny (C,)-sized epilogue in plain JAX: fold stats into scale/bias so
        # pass 2 is a pure FMA with only two per-channel vector inputs.
        stats = stats.sum(axis=0)                        # (C, 2)
        mean = stats[:, :1] * inv_count                  # (C, 1)
        var = jnp.maximum(stats[:, 1:2] * inv_count - mean * mean, 0.0)
        inv_std = jax.lax.rsqrt(var + EPS)
        scale2 = g2.astype(jnp.float32) * inv_std
        bias2 = b2.astype(jnp.float32) - mean * scale2

        x_spec = pl.BlockSpec((None, c_tile, hw_tile),
                              lambda ci, ni, hi: (ni, ci, hi))
        vec_spec = pl.BlockSpec((c_tile, 1), lambda ci, ni, hi: (ci, 0))
        out3 = pl.pallas_call(
            _bn_norm_kernel,
            out_shape=jax.ShapeDtypeStruct((n, c, hw_work), x.dtype),
            grid=(c_blocks, n, hw_blocks),
            in_specs=[x_spec, vec_spec, vec_spec],
            out_specs=x_spec,
            compiler_params=pltpu.CompilerParams(
                dimension_semantics=("parallel", "parallel", "parallel"),
                vmem_limit_bytes=vmem_limit),
        )(x3, scale2, bias2)

    if hw_work != hw:
        out3 = out3[:, :, :hw]
    return out3.reshape(n, c, h, w)


# TODO(synk): backward pass (batchnorm2d_backward / ctx.save_for_backward) is
# not implemented; only the forward semantics of the module are covered.

if __name__ == "__main__":
    key = jax.random.PRNGKey(0)
    n, c, h, w = 2, 4, 16, 16
    x = jax.random.normal(key, (n, c, h, w), dtype=jnp.float32) * 2.0 + 0.5

    # Deterministic parameter init, matching nn.Parameter(torch.ones/zeros).
    gamma = jnp.ones((c,), dtype=jnp.float32)
    beta = jnp.zeros((c,), dtype=jnp.float32)

    # Pure-JAX reference (training-mode BN: biased variance).
    mean = jnp.mean(x, axis=(0, 2, 3), keepdims=True)
    var = jnp.mean((x - mean) ** 2, axis=(0, 2, 3), keepdims=True)
    ref = (x - mean) / jnp.sqrt(var + EPS) * gamma.reshape(1, c, 1, 1) \
          + beta.reshape(1, c, 1, 1)

    # Default (fused single-pass) path.
    out_fused = jax.block_until_ready(batchnorm2d_forward(x, gamma, beta))
    assert jnp.allclose(out_fused, ref, atol=1e-4, rtol=1e-4), \
        "fused path mismatch vs reference"

    # Two-pass fallback path (exercised explicitly for coverage).
    out_2p = jax.block_until_ready(
        batchnorm2d_forward(x, gamma, beta, force_two_pass=True))
    assert jnp.allclose(out_2p, ref, atol=1e-4, rtol=1e-4), \
        "two-pass path mismatch vs reference"

    print("KERNEL_OK")
</pallas_src>

<mosaic_0001>
module attributes {stable_mosaic.version = 11 : i64} {
  func.func @_bn_fused_kernel(%arg0: i32, %arg1: memref<2x4x256xf32, #tpu.memory_space<vmem>>, %arg2: memref<4x1xf32, #tpu.memory_space<vmem>>, %arg3: memref<4x1xf32, #tpu.memory_space<vmem>>, %arg4: memref<2x4x256xf32, #tpu.memory_space<vmem>>) attributes {dimension_semantics = [#tpu.dimension_semantics<parallel>], iteration_bounds = array<i64: 1>, scalar_prefetch = 0 : i64, scratch_operands = 0 : i64, tpu.core_type = #tpu.core_type<tc>, window_params = [{transform_indices = @transform_0, window_bounds = array<i64: 2, 4, 256>}, {transform_indices = @transform_1, window_bounds = array<i64: 4, 1>}, {transform_indices = @transform_2, window_bounds = array<i64: 4, 1>}, {transform_indices = @transform_3, window_bounds = array<i64: 2, 4, 256>}]} {
    %c0 = arith.constant 0 : index
    %c0_0 = arith.constant 0 : index
    %c0_1 = arith.constant 0 : index
    %0 = vector.load %arg1[%c0, %c0_0, %c0_1] : memref<2x4x256xf32, #tpu.memory_space<vmem>>, vector<2x4x256xf32>
    %cst = arith.constant dense<0.000000e+00> : vector<4xf32>
    %1 = vector.multi_reduction <add>, %0, %cst [0, 2] : vector<2x4x256xf32> to vector<4xf32>
    %2 = vector.shape_cast %1 : vector<4xf32> to vector<1x4x1xf32>
    %3 = arith.mulf %0, %0 : vector<2x4x256xf32>
    %cst_2 = arith.constant dense<0.000000e+00> : vector<4xf32>
    %4 = vector.multi_reduction <add>, %3, %cst_2 [0, 2] : vector<2x4x256xf32> to vector<4xf32>
    %5 = vector.shape_cast %4 : vector<4xf32> to vector<1x4x1xf32>
    %cst_3 = arith.constant 0.001953125 : f32
    %6 = vector.broadcast %cst_3 : f32 to vector<1x4x1xf32>
    %7 = arith.mulf %2, %6 : vector<1x4x1xf32>
    %cst_4 = arith.constant 0.001953125 : f32
    %8 = vector.broadcast %cst_4 : f32 to vector<1x4x1xf32>
    %9 = arith.mulf %5, %8 : vector<1x4x1xf32>
    %10 = arith.mulf %7, %7 : vector<1x4x1xf32>
    %11 = arith.subf %9, %10 : vector<1x4x1xf32>
    %cst_5 = arith.constant 0.000000e+00 : f32
    %12 = vector.broadcast %cst_5 : f32 to vector<1x4x1xf32>
    %13 = arith.maximumf %11, %12 : vector<1x4x1xf32>
    %cst_6 = arith.constant 9.99999974E-6 : f32
    %14 = vector.broadcast %cst_6 : f32 to vector<1x4x1xf32>
    %15 = arith.addf %13, %14 : vector<1x4x1xf32>
    %16 = math.rsqrt %15 : vector<1x4x1xf32>
    %c0_7 = arith.constant 0 : index
    %c0_8 = arith.constant 0 : index
    %17 = vector.load %arg2[%c0_7, %c0_8] : memref<4x1xf32, #tpu.memory_space<vmem>>, vector<4x1xf32>
    %18 = vector.shape_cast %17 : vector<4x1xf32> to vector<1x4x1xf32>
    %c0_9 = arith.constant 0 : index
    %c0_10 = arith.constant 0 : index
    %19 = vector.load %arg3[%c0_9, %c0_10] : memref<4x1xf32, #tpu.memory_space<vmem>>, vector<4x1xf32>
    %20 = vector.shape_cast %19 : vector<4x1xf32> to vector<1x4x1xf32>
    %21 = arith.mulf %18, %16 : vector<1x4x1xf32>
    %22 = arith.mulf %7, %21 : vector<1x4x1xf32>
    %23 = arith.subf %20, %22 : vector<1x4x1xf32>
    %24 = vector.broadcast %21 : vector<1x4x1xf32> to vector<2x4x256xf32>
    %25 = arith.mulf %0, %24 : vector<2x4x256xf32>
    %26 = vector.broadcast %23 : vector<1x4x1xf32> to vector<2x4x256xf32>
    %27 = arith.addf %25, %26 : vector<2x4x256xf32>
    %c0_11 = arith.constant 0 : index
    %c0_12 = arith.constant 0 : index
    %c0_13 = arith.constant 0 : index
    %28 = vector.load %arg4[%c0_11, %c0_12, %c0_13] : memref<2x4x256xf32, #tpu.memory_space<vmem>>, vector<2x4x256xf32>
    tpu.vector_store %arg4[%c0_11, %c0_12, %c0_13], %27 {strides = array<i32>} : memref<2x4x256xf32, #tpu.memory_space<vmem>>, vector<2x4x256xf32>,
    return
  }
  func.func @transform_0(%arg0: i32) -> (i32, i32, i32) {
    %c0_i32 = arith.constant 0 : i32
    %c0_i32_0 = arith.constant 0 : i32
    %c0_i32_1 = arith.constant 0 : i32
    return %c0_i32, %arg0, %c0_i32_0 : i32, i32, i32
  }
  func.func @transform_1(%arg0: i32) -> (i32, i32) {
    %c0_i32 = arith.constant 0 : i32
    %c0_i32_0 = arith.constant 0 : i32
    return %arg0, %c0_i32 : i32, i32
  }
  func.func @transform_2(%arg0: i32) -> (i32, i32) {
    %c0_i32 = arith.constant 0 : i32
    %c0_i32_0 = arith.constant 0 : i32
    return %arg0, %c0_i32 : i32, i32
  }
  func.func @transform_3(%arg0: i32) -> (i32, i32, i32) {
    %c0_i32 = arith.constant 0 : i32
    %c0_i32_0 = arith.constant 0 : i32
    %c0_i32_1 = arith.constant 0 : i32
    return %c0_i32, %arg0, %c0_i32_0 : i32, i32, i32
  }
}

</mosaic_0001>

<bundles_post_ra>
// kernel: tpu_custom_call.1
= control target key start
LH: loop header
LB: loop body
LE: loop exit
PB: predicated region body
PF: predicated region fallthrough
CT: control target
= control target key end

     0   :  { %8 = vsyncpa [#allocation3], 0  ;;  %s270_s0 = inlined_call_operand.hbm [shape: f32[2,4,256], index: 0, kind: input, shape index: {}]   ;;  %s271_s1 = inlined_call_operand.vmem [shape: f32[4,1], index: 1, kind: input, shape index: {}]   ;;  %s272_s2 = inlined_call_operand.vmem [shape: f32[4,1], index: 2, kind: input, shape index: {}]   ;;  %s273_s3 = inlined_call_operand.hbm [shape: f32[2,4,256], index: 3, kind: output, shape index: {}]  }
   0x1   :  { %9 = vsyncpa [#allocation4], 0  ;;  %s14_s14 = sshll.u32 %s270_s0, 4  ;;  %s206_s15 = smov [#allocation2]   ;;  %s15_s14 = int_to_ptr.hbm [resolvable:$true] %s14_s14 }
   0x2   :  { %s16_s16 = sshll.u32 %s206_s15, 4  ;;  %s207_s17 = smov 128   ;;  %s17_s16 = int_to_ptr.vmem [resolvable:$true] %s16_s16 }
   0x3   :  { %s208_s18 = smov 8  }
   0x4   :  { %22 = dma.hbm_to_vmem [thread:$0]  %s15_s14, 256, %s17_s16, [#allocation3], %s207_s17, %s207_s17, %s208_s18  }
   0x5   :  { %202 = dma.done.wait [#allocation3], 256  }
   0x6   :  { %203 = vsyncadd [#allocation3], 4294967040  ;;  %v238_v0 = vld [vmem:[#allocation2] sm:$0xff]  ;;  %v240_v1 = vld [vmem:[#allocation2 + $0x8] sm:$0xff]  ;;  %vm46_vm0 = vcmask 1043456   ;;  %v209_v26 = vmov 0  }
   0x7   :  { %35 = vst [vmem:[#allocation1] ss:$2 sm:$0xff] %v238_v0  ;;  %v56_v2 = vmul.f32 %v238_v0, %v238_v0  ;;  %v57_v3 = vmul.f32 %v240_v1, %v240_v1  ;;  %150 = vset.pattern.permute.xlu1 %v209_v26  ;;  %151 = vset.pattern.permute.xlu0 %v209_v26  ;;  %v96_v41 = vld [vmem:[%s271_s1] sm:$0xf]  ;;  %v210_v47 = vmov 839922192  }
   0x8   :  { %39 = vst [vmem:[#allocation1 + $0x10] ss:$2 sm:$0xff] %v240_v1  ;;  %v97_v45 = vld [vmem:[%s272_s2] sm:$0xf]  ;;  %v106_v48 = vunpack.c.l.s4 %v210_v47  ;;  %s211_s1 = smov [#allocation5]   ;;  %s131_s25 = sshll.u32 %s273_s3, 4  ;;  %s132_s25 = int_to_ptr.hbm [resolvable:$true] %s131_s25 }
   0x9   :  { %s129_s22 = sshll.u32 %s211_s1, 4  ;;  %s130_s22 = int_to_ptr.vmem [resolvable:$true] %s129_s22 }
   0xa   :  { %v107_v50 = vunpack.c.0.s8 %v106_v48 }
   0xe   :  { %v36_v4 = vld.sshfl [vmem:[#allocation1] sm:$0xff pattern:$0x75316420]  ;;  %v37_v5 = vld.sshfl [vmem:[#allocation1 + $0x8] sm:$0xff pattern:$0x75316420] }
   0xf   :  { %v40_v6 = vld.sshfl [vmem:[#allocation1 + $0x10] sm:$0xff pattern:$0x75316420]  ;;  %v41_v7 = vld.sshfl [vmem:[#allocation1 + $0x18] sm:$0xff pattern:$0x75316420] }
  0x10   :  { %v47_v8 = vsel %vm46_vm0, %v36_v4, 0.0  ;;  %v48_v9 = vsel %vm46_vm0, %v37_v5, 0.0  ;;  %v50_v10 = vsel %vm46_vm0, %v40_v6, 0.0  ;;  %60 = vst [vmem:[#allocation1] ss:$2 sm:$0xff] %v56_v2  ;;  %v52_v12 = vsel %vm46_vm0, %v41_v7, 0.0 }
  0x11   :  { %v49_v11 = vadd.f32 %v48_v9, %v47_v8  ;;  %64 = vst [vmem:[#allocation1 + $0x10] ss:$2 sm:$0xff] %v57_v3 }
  0x13   :  { %v51_v13 = vadd.f32 %v50_v10, %v49_v11 }
  0x15   :  { %v53_v14 = vadd.f32 %v52_v12, %v51_v13 }
  0x17   :  { %54 = vadd.xlane.f32.xlu0 %v53_v14  ;;  %v61_v15 = vld.sshfl [vmem:[#allocation1] sm:$0xff pattern:$0x75316420]  ;;  %v62_v16 = vld.sshfl [vmem:[#allocation1 + $0x8] sm:$0xff pattern:$0x75316420] }
  0x18   :  { %v65_v17 = vld.sshfl [vmem:[#allocation1 + $0x10] sm:$0xff pattern:$0x75316420]  ;;  %v66_v18 = vld.sshfl [vmem:[#allocation1 + $0x18] sm:$0xff pattern:$0x75316420] }
  0x19   :  { %v71_v19 = vsel %vm46_vm0, %v61_v15, 0.0  ;;  %v72_v20 = vsel %vm46_vm0, %v62_v16, 0.0  ;;  %v74_v21 = vsel %vm46_vm0, %v65_v17, 0.0  ;;  %v76_v23 = vsel %vm46_vm0, %v66_v18, 0.0 }
  0x1a   :  { %v73_v22 = vadd.f32 %v72_v20, %v71_v19 }
  0x1c   :  { %v75_v24 = vadd.f32 %v74_v21, %v73_v22 }
  0x1e   :  { %v77_v25 = vadd.f32 %v76_v23, %v75_v24 }
  0x20   :  { %78 = vadd.xlane.f32.xlu0 %v77_v25 }
  0x8a   :  { %v55_v27 = vpop.xlane.xlu0 %54 }
  0x8b   :  { %v80_v28 = vmul.f32 0.001953125, %v55_v27 }
  0x8d   :  { %v82_v30 = vmul.f32 %v80_v28, %v80_v28 }
  0x93   :  { %v79_v29 = vpop.xlane.xlu0 %78 }
  0x94   :  { %v81_v31 = vmul.f32 0.001953125, %v79_v29 }
  0x96   :  { %v83_v32 = vsub.f32 %v81_v31, %v82_v30 }
  0x98   :  { %v84_v33 = vmax.f32 %v83_v32, 0.0 }
  0x9a   :  { %v85_v34 = vadd.f32 1e-05, %v84_v33 }
  0x9c   :  { %152 = vrsqrt.f32 %v85_v34  ;;  %vm92_vm2 = vweird.f32 %v85_v34 }
  0xa2   :  { %v153_v35 = vpop.eup %152 }
  0xa3   :  { %v87_v36 = vmul.f32 %v153_v35, %v85_v34  ;;  %vm93_vm1 = vweird.f32 %v153_v35 }
  0xa4   :  { %vm94_vm3 = vmor %vm92_vm2, %vm93_vm1 }
  0xa5   :  { %v88_v37 = vmul.f32 %v153_v35, %v87_v36 }
  0xa7   :  { %v89_v38 = vmul.f32 0.5, %v88_v37 }
  0xa9   :  { %v90_v39 = vsub.f32 1.5, %v89_v38 }
  0xab   :  { %v91_v40 = vmul.f32 %v153_v35, %v90_v39 }
  0xad   :  { %v95_v42 = vsel %vm94_vm3, %v153_v35, %v91_v40 }
  0xae   :  { %v98_v43 = vmul.f32 %v96_v41, %v95_v42 }
  0xb0   :  { %103 = vperm.xlu1 %150, %v98_v43   ;;  %v99_v44 = vmul.f32 %v98_v43, %v80_v28 }
  0xb2   :  { %v100_v46 = vsub.f32 %v97_v45, %v99_v44 }
  0xb8   :  { %114 = vperm.xlu1 %150, %v100_v46  }
 0x122   :  { %v104_v49 = vpop.permute.xlu1 %103 }
 0x123   :  { %v108_v51 = vperm.slane %v104_v49, %v107_v50 }
 0x125   :  { %v110_v53 = vmul.f32 %v108_v51, %v238_v0  ;;  %v111_v54 = vmul.f32 %v108_v51, %v240_v1 }
 0x12a   :  { %v115_v52 = vpop.permute.xlu1 %114 }
 0x12b   :  { %v119_v55 = vperm.slane %v115_v52, %v107_v50 }
 0x12d   :  { %v121_v56 = vadd.f32 %v119_v55, %v110_v53  ;;  %v122_v57 = vadd.f32 %v119_v55, %v111_v54 }
 0x12f   :  { %123 = vst [vmem:[#allocation5] sm:$0xff] %v121_v56 }
 0x130   :  { %124 = vst [vmem:[#allocation5 + $0x8] sm:$0xff] %v122_v57 }
 0x131   :  { %137 = dma.vmem_to_hbm [thread:$0]  %s130_s22, 256, %s132_s25, [#allocation4], %s207_s17, %s207_s17, %s208_s18  }
 0x132   :  { %204 = dma.done.wait [#allocation4], 256  }
 0x133   :  { %205 = vsyncadd [#allocation4], 4294967040 }
 0x134   :  { %142 = vsyncpa [#allocation3], 1 }
 0x135   :  { %143 = vsyncpa [#allocation4], 1 }

</bundles_post_ra>
